<compile_context>
chip_gen: v7x
topology: tpu7x:2x2x1
jax: 0.10.0
libtpu: 0.0.40
codegen_flags: <defaults>
</compile_context>

<pallas_src>
import math
import functools

import jax
import jax.numpy as jnp
from jax.experimental import pallas as pl
from jax.experimental.pallas import tpu as pltpu


def _mha_kernel(block_b, seq_len, head_dim, matmul_dtype,
                q_ref, k_ref, v_ref,
                wq_ref, wk_ref, wv_ref,
                bq_ref, bk_ref, bv_ref,
                wpost_ref, bpost_ref,
                o_ref):
    """One block of `block_b` batch elements per grid step, fully fused in VMEM.

    MXU operands are cast to `matmul_dtype` (bf16); accumulation and all softmax
    math stay in f32.  The 1/sqrt(head_dim) scale is folded into wq/bq in the
    wrapper, and concat + linear_concat + linear_out are folded into a single
    (head_dim x d_model) matmul (w_post / b_post).
    """
    rows = block_b * seq_len
    d_model = q_ref.shape[-1]

    # --- three separate projections (no packed input, no zero-padded weight) ---
    q2d = q_ref[...].reshape(rows, d_model).astype(matmul_dtype)
    k2d = k_ref[...].reshape(rows, d_model).astype(matmul_dtype)
    v2d = v_ref[...].reshape(rows, d_model).astype(matmul_dtype)

    q = (jnp.dot(q2d, wq_ref[...], preferred_element_type=jnp.float32)
         + bq_ref[...]).reshape(block_b, seq_len, head_dim)   # scale already folded in
    k = (jnp.dot(k2d, wk_ref[...], preferred_element_type=jnp.float32)
         + bk_ref[...]).reshape(block_b, seq_len, head_dim)
    v = (jnp.dot(v2d, wv_ref[...], preferred_element_type=jnp.float32)
         + bv_ref[...]).reshape(block_b, seq_len, head_dim)

    # --- scaled dot-product attention (einsum = batched dot over block_b) ---
    s = jnp.einsum("bqd,bkd->bqk",
                   q.astype(matmul_dtype), k.astype(matmul_dtype),
                   preferred_element_type=jnp.float32)
    s = s - jnp.max(s, axis=-1, keepdims=True)
    p = jnp.exp(s)                                      # un-normalized probs, f32
    denom = jnp.sum(p, axis=-1, keepdims=True)          # (block_b, S, 1)
    attn = jnp.einsum("bqk,bkd->bqd",
                      p.astype(matmul_dtype), v.astype(matmul_dtype),
                      preferred_element_type=jnp.float32)
    # Normalize AFTER the PV matmul: (S x head_dim) elements scaled, not (S x S).
    attn = attn * pl.reciprocal(denom, approx=True)

    # --- folded concat + linear_concat + linear_out: single head_dim-K matmul ---
    out = jnp.dot(attn.reshape(rows, head_dim).astype(matmul_dtype), wpost_ref[...],
                  preferred_element_type=jnp.float32) + bpost_ref[...]
    o_ref[...] = out.astype(o_ref.dtype)


def _pick_block_b(B, S, d_model, head_dim, vmem_budget_bytes):
    """Largest batch block whose estimated VMEM working set fits the budget.

    Prefers >= 2 grid steps (so the 'parallel' batch axis can be split across
    v7x's two TensorCores) and keeps the (block_b*S, d_model) output block and
    the in-kernel collapse reshapes (8,128)-aligned.
    """
    def step_bytes(bb):
        rows = bb * S
        io = 4 * rows * d_model * 4               # q,k,v input blocks + output block (f32)
        scores = bb * S * S * 4                   # f32 scores / probs
        proj = 3 * rows * head_dim * (4 + 2)      # q/k/v f32 + bf16 MXU copies
        return 2 * io + 2 * scores + proj         # 2x: double buffering / live temps

    if S % 8:
        # Odd S: only the full-array block is guaranteed (8,128)-legal and
        # keeps the (block_b, S, d) -> (rows, d) reshape layout-free.
        return B
    candidates = [bb for bb in range(1, B + 1)
                  if B % bb == 0 and step_bytes(bb) <= vmem_budget_bytes]
    if not candidates:
        return 1
    multi_step = [bb for bb in candidates if B // bb >= 2]
    return max(multi_step) if multi_step else max(candidates)


def multi_head_attention(query, key, value, params, *, n_heads,
                         block_b=None, matmul_dtype=jnp.bfloat16,
                         vmem_budget_bytes=24 * 1024 * 1024):
    B, S, d_model = query.shape
    head_dim = d_model // n_heads
    scale = 1.0 / math.sqrt(head_dim)
    (wq, bq), (wk, bk), (wv, bv), (wc, bc), (wo, bo) = params

    # ---- wrapper-side algebraic folds (exact, all done in f32 before downcast) ----
    wq_s = wq * scale                                               # fold 1/sqrt(head_dim)
    bq_s = bq * scale
    # concat([attn]*n_heads) @ Wc == attn @ sum_h Wc[h-block]; compose with Wo.
    wc_fold = wc.reshape(n_heads, head_dim, d_model).sum(axis=0)    # (head_dim, d_model)
    w_post = wc_fold @ wo                                           # (head_dim, d_model)
    b_post = bc @ wo + bo                                           # (1, d_model)

    # MXU operands in bf16 (f32 accumulation in-kernel); biases stay f32.
    wq_c = wq_s.astype(matmul_dtype)
    wk_c = wk.astype(matmul_dtype)
    wv_c = wv.astype(matmul_dtype)
    wpost_c = w_post.astype(matmul_dtype)

    # ---- VMEM-budget-aware batch blocking ----
    if block_b is None:
        block_b = _pick_block_b(B, S, d_model, head_dim, vmem_budget_bytes)
    grid_b = B // block_b
    rows = block_b * S

    kernel = functools.partial(_mha_kernel, block_b, S, head_dim, matmul_dtype)

    # Advisory cost: only the real (non-zero) work is counted.
    flops = 2 * B * S * (3 * d_model * head_dim        # three projections
                         + 2 * S * head_dim            # q k^T + p v
                         + head_dim * d_model)         # folded concat+out matmul
    bytes_accessed = (4 * B * S * d_model * 4                                     # q,k,v,out f32
                      + 2 * (wq_c.size + wk_c.size + wv_c.size + wpost_c.size)   # bf16 weights
                      + 4 * (bq_s.size + bk.size + bv.size + b_post.size))       # f32 biases
    cost = pl.CostEstimate(flops=flops, transcendentals=B * S * S,
                           bytes_accessed=bytes_accessed)

    def resident(arr):
        # Full-array block with a constant index map: stays resident across grid steps.
        return pl.BlockSpec(arr.shape, lambda b: (0,) * arr.ndim)

    act_spec = pl.BlockSpec((block_b, S, d_model), lambda b: (b, 0, 0))

    out2d = pl.pallas_call(
        kernel,
        out_shape=jax.ShapeDtypeStruct((B * S, d_model), query.dtype),
        grid_spec=pl.GridSpec(
            grid=(grid_b,),
            in_specs=[
                act_spec, act_spec, act_spec,
                resident(wq_c), resident(wk_c), resident(wv_c),
                resident(bq_s), resident(bk), resident(bv),
                resident(wpost_c), resident(b_post),
            ],
            out_specs=pl.BlockSpec((rows, d_model), lambda b: (b, 0)),
        ),
        compiler_params=pltpu.CompilerParams(
            dimension_semantics=("parallel",),
            vmem_limit_bytes=48 * 1024 * 1024),
        cost_estimate=cost,
    )(query, key, value, wq_c, wk_c, wv_c, bq_s, bk, bv, wpost_c, b_post)

    return out2d.reshape(B, S, d_model)


def init_params(key, d_model, head_dim):
    """Deterministic PyTorch-style uniform(-1/sqrt(fan_in), 1/sqrt(fan_in)) init.

    Weights are stored [in_features, out_features]; biases as [1, out_features].
    """
    def linear(k, fan_in, fan_out):
        kw, kb = jax.random.split(k)
        bound = 1.0 / math.sqrt(fan_in)
        w = jax.random.uniform(kw, (fan_in, fan_out), jnp.float32, -bound, bound)
        b = jax.random.uniform(kb, (1, fan_out), jnp.float32, -bound, bound)
        return w, b

    ks = jax.random.split(key, 5)
    wq, bq = linear(ks[0], d_model, head_dim)   # linear_layers[0]
    wk, bk = linear(ks[1], d_model, head_dim)   # linear_layers[1]
    wv, bv = linear(ks[2], d_model, head_dim)   # linear_layers[2]
    wc, bc = linear(ks[3], d_model, d_model)    # linear_concat
    wo, bo = linear(ks[4], d_model, d_model)    # linear_out
    return (wq, bq), (wk, bk), (wv, bv), (wc, bc), (wo, bo)


def _reference(query, key, value, params, n_heads):
    """Pure-JAX f32 reference with the ORIGINAL (unfolded) parameterization."""
    (wq, bq), (wk, bk), (wv, bv), (wc, bc), (wo, bo) = params
    head_dim = wq.shape[1]
    q = query @ wq + bq
    k = key @ wk + bk
    v = value @ wv + bv
    s = jnp.einsum("bqd,bkd->bqk", q, k) / math.sqrt(head_dim)
    p = jax.nn.softmax(s, axis=-1)
    attn = jnp.einsum("bqk,bkd->bqd", p, v)
    concat = jnp.concatenate([attn] * n_heads, axis=2)
    return (concat @ wc + bc) @ wo + bo


if __name__ == "__main__":
    n_heads, d_model = 4, 32
    B, S = 2, 8
    head_dim = d_model // n_heads

    root = jax.random.PRNGKey(0)
    kq, kk, kv, kp = jax.random.split(root, 4)
    query = jax.random.normal(kq, (B, S, d_model), jnp.float32)
    key = jax.random.normal(kk, (B, S, d_model), jnp.float32)
    value = jax.random.normal(kv, (B, S, d_model), jnp.float32)
    params = init_params(kp, d_model, head_dim)

    out = multi_head_attention(query, key, value, params, n_heads=n_heads)
    out = jax.block_until_ready(out)

    ref = _reference(query, key, value, params, n_heads)
    assert out.shape == (B, S, d_model)
    # Tolerance reflects bf16 MXU operands (f32 accumulation), the approx
    # reciprocal in the softmax, and the folded-weight rounding order vs the
    # unfolded f32 reference.
    assert jnp.allclose(out, ref, atol=2e-2, rtol=2e-2), \
        float(jnp.max(jnp.abs(out - ref)))

    print("KERNEL_OK")
</pallas_src>

<mosaic_0001>
module attributes {stable_mosaic.version = 11 : i64} {
  func.func @_mha_kernel(%arg0: i32, %arg1: memref<1x8x32xf32, #tpu.memory_space<vmem>>, %arg2: memref<1x8x32xf32, #tpu.memory_space<vmem>>, %arg3: memref<1x8x32xf32, #tpu.memory_space<vmem>>, %arg4: memref<32x8xbf16, #tpu.memory_space<vmem>>, %arg5: memref<32x8xbf16, #tpu.memory_space<vmem>>, %arg6: memref<32x8xbf16, #tpu.memory_space<vmem>>, %arg7: memref<1x8xf32, #tpu.memory_space<vmem>>, %arg8: memref<1x8xf32, #tpu.memory_space<vmem>>, %arg9: memref<1x8xf32, #tpu.memory_space<vmem>>, %arg10: memref<8x32xbf16, #tpu.memory_space<vmem>>, %arg11: memref<1x32xf32, #tpu.memory_space<vmem>>, %arg12: memref<8x32xf32, #tpu.memory_space<vmem>>) attributes {dimension_semantics = [#tpu.dimension_semantics<parallel>], iteration_bounds = array<i64: 2>, scalar_prefetch = 0 : i64, scratch_operands = 0 : i64, tpu.core_type = #tpu.core_type<tc>, window_params = [{transform_indices = @transform_0, window_bounds = array<i64: 1, 8, 32>}, {transform_indices = @transform_1, window_bounds = array<i64: 1, 8, 32>}, {transform_indices = @transform_2, window_bounds = array<i64: 1, 8, 32>}, {pipeline_mode = #tpu.pipeline_mode<synchronous>, transform_indices = @transform_3, window_bounds = array<i64: 32, 8>}, {pipeline_mode = #tpu.pipeline_mode<synchronous>, transform_indices = @transform_4, window_bounds = array<i64: 32, 8>}, {pipeline_mode = #tpu.pipeline_mode<synchronous>, transform_indices = @transform_5, window_bounds = array<i64: 32, 8>}, {pipeline_mode = #tpu.pipeline_mode<synchronous>, transform_indices = @transform_6, window_bounds = array<i64: 1, 8>}, {pipeline_mode = #tpu.pipeline_mode<synchronous>, transform_indices = @transform_7, window_bounds = array<i64: 1, 8>}, {pipeline_mode = #tpu.pipeline_mode<synchronous>, transform_indices = @transform_8, window_bounds = array<i64: 1, 8>}, {pipeline_mode = #tpu.pipeline_mode<synchronous>, transform_indices = @transform_9, window_bounds = array<i64: 8, 32>}, {pipeline_mode = #tpu.pipeline_mode<synchronous>, transform_indices = @transform_10, window_bounds = array<i64: 1, 32>}, {transform_indices = @transform_11, window_bounds = array<i64: 8, 32>}]} {
    %c0 = arith.constant 0 : index
    %c0_0 = arith.constant 0 : index
    %c0_1 = arith.constant 0 : index
    %0 = vector.load %arg1[%c0, %c0_0, %c0_1] : memref<1x8x32xf32, #tpu.memory_space<vmem>>, vector<1x8x32xf32>
    %1 = vector.shape_cast %0 : vector<1x8x32xf32> to vector<8x32xf32>
    %2 = arith.truncf %1 : vector<8x32xf32> to vector<8x32xbf16>
    %c0_2 = arith.constant 0 : index
    %c0_3 = arith.constant 0 : index
    %c0_4 = arith.constant 0 : index
    %3 = vector.load %arg2[%c0_2, %c0_3, %c0_4] : memref<1x8x32xf32, #tpu.memory_space<vmem>>, vector<1x8x32xf32>
    %4 = vector.shape_cast %3 : vector<1x8x32xf32> to vector<8x32xf32>
    %5 = arith.truncf %4 : vector<8x32xf32> to vector<8x32xbf16>
    %c0_5 = arith.constant 0 : index
    %c0_6 = arith.constant 0 : index
    %c0_7 = arith.constant 0 : index
    %6 = vector.load %arg3[%c0_5, %c0_6, %c0_7] : memref<1x8x32xf32, #tpu.memory_space<vmem>>, vector<1x8x32xf32>
    %7 = vector.shape_cast %6 : vector<1x8x32xf32> to vector<8x32xf32>
    %8 = arith.truncf %7 : vector<8x32xf32> to vector<8x32xbf16>
    %c0_8 = arith.constant 0 : index
    %c0_9 = arith.constant 0 : index
    %9 = vector.load %arg4[%c0_8, %c0_9] : memref<32x8xbf16, #tpu.memory_space<vmem>>, vector<32x8xbf16>
    %cst = arith.constant dense<0.000000e+00> : vector<8x8xf32>
    %10 = tpu.matmul %2, %9, %cst {dimension_numbers = #tpu.dot_dimension_numbers<[1], [0], [0], [1], [0, 0, 1, 1], [], []>} : vector<8x32xbf16>, vector<32x8xbf16>, vector<8x8xf32> -> vector<8x8xf32>
    %c0_10 = arith.constant 0 : index
    %c0_11 = arith.constant 0 : index
    %11 = vector.load %arg7[%c0_10, %c0_11] : memref<1x8xf32, #tpu.memory_space<vmem>>, vector<1x8xf32>
    %12 = vector.broadcast %11 : vector<1x8xf32> to vector<8x8xf32>
    %13 = arith.addf %10, %12 : vector<8x8xf32>
    %14 = vector.shape_cast %13 : vector<8x8xf32> to vector<1x8x8xf32>
    %c0_12 = arith.constant 0 : index
    %c0_13 = arith.constant 0 : index
    %15 = vector.load %arg5[%c0_12, %c0_13] : memref<32x8xbf16, #tpu.memory_space<vmem>>, vector<32x8xbf16>
    %cst_14 = arith.constant dense<0.000000e+00> : vector<8x8xf32>
    %16 = tpu.matmul %5, %15, %cst_14 {dimension_numbers = #tpu.dot_dimension_numbers<[1], [0], [0], [1], [0, 0, 1, 1], [], []>} : vector<8x32xbf16>, vector<32x8xbf16>, vector<8x8xf32> -> vector<8x8xf32>
    %c0_15 = arith.constant 0 : index
    %c0_16 = arith.constant 0 : index
    %17 = vector.load %arg8[%c0_15, %c0_16] : memref<1x8xf32, #tpu.memory_space<vmem>>, vector<1x8xf32>
    %18 = vector.broadcast %17 : vector<1x8xf32> to vector<8x8xf32>
    %19 = arith.addf %16, %18 : vector<8x8xf32>
    %20 = vector.shape_cast %19 : vector<8x8xf32> to vector<1x8x8xf32>
    %c0_17 = arith.constant 0 : index
    %c0_18 = arith.constant 0 : index
    %21 = vector.load %arg6[%c0_17, %c0_18] : memref<32x8xbf16, #tpu.memory_space<vmem>>, vector<32x8xbf16>
    %cst_19 = arith.constant dense<0.000000e+00> : vector<8x8xf32>
    %22 = tpu.matmul %8, %21, %cst_19 {dimension_numbers = #tpu.dot_dimension_numbers<[1], [0], [0], [1], [0, 0, 1, 1], [], []>} : vector<8x32xbf16>, vector<32x8xbf16>, vector<8x8xf32> -> vector<8x8xf32>
    %c0_20 = arith.constant 0 : index
    %c0_21 = arith.constant 0 : index
    %23 = vector.load %arg9[%c0_20, %c0_21] : memref<1x8xf32, #tpu.memory_space<vmem>>, vector<1x8xf32>
    %24 = vector.broadcast %23 : vector<1x8xf32> to vector<8x8xf32>
    %25 = arith.addf %22, %24 : vector<8x8xf32>
    %26 = vector.shape_cast %25 : vector<8x8xf32> to vector<1x8x8xf32>
    %27 = arith.truncf %14 : vector<1x8x8xf32> to vector<1x8x8xbf16>
    %28 = arith.truncf %20 : vector<1x8x8xf32> to vector<1x8x8xbf16>
    "tpu.trace_start"() <{level = 10 : i32, message = "bqd,bkd->bqk"}> : () -> ()
    %cst_22 = arith.constant dense<0.000000e+00> : vector<1x8x8xf32>
    %29 = tpu.matmul %27, %28, %cst_22 {dimension_numbers = #tpu.dot_dimension_numbers<[2], [2], [1], [1], [0, 0, 0, 1, 1, 1], [0], [0]>} : vector<1x8x8xbf16>, vector<1x8x8xbf16>, vector<1x8x8xf32> -> vector<1x8x8xf32>
    "tpu.trace_stop"() : () -> ()
    %cst_23 = arith.constant dense<0xFF800000> : vector<1x8xf32>
    %30 = vector.multi_reduction <maximumf>, %29, %cst_23 [2] : vector<1x8x8xf32> to vector<1x8xf32>
    %31 = vector.shape_cast %30 : vector<1x8xf32> to vector<1x8x1xf32>
    %32 = vector.broadcast %31 : vector<1x8x1xf32> to vector<1x8x8xf32>
    %33 = arith.subf %29, %32 : vector<1x8x8xf32>
    %34 = math.exp %33 : vector<1x8x8xf32>
    %cst_24 = arith.constant dense<0.000000e+00> : vector<1x8xf32>
    %35 = vector.multi_reduction <add>, %34, %cst_24 [2] : vector<1x8x8xf32> to vector<1x8xf32>
    %36 = vector.shape_cast %35 : vector<1x8xf32> to vector<1x8x1xf32>
    %37 = arith.truncf %34 : vector<1x8x8xf32> to vector<1x8x8xbf16>
    %38 = arith.truncf %26 : vector<1x8x8xf32> to vector<1x8x8xbf16>
    "tpu.trace_start"() <{level = 10 : i32, message = "bqk,bkd->bqd"}> : () -> ()
    %cst_25 = arith.constant dense<0.000000e+00> : vector<1x8x8xf32>
    %39 = tpu.matmul %37, %38, %cst_25 {dimension_numbers = #tpu.dot_dimension_numbers<[2], [1], [1], [2], [0, 0, 0, 1, 1, 2], [0], [0]>} : vector<1x8x8xbf16>, vector<1x8x8xbf16>, vector<1x8x8xf32> -> vector<1x8x8xf32>
    "tpu.trace_stop"() : () -> ()
    %40 = tpu.reciprocal %36 {approx = true} : vector<1x8x1xf32> -> vector<1x8x1xf32>
    %41 = vector.broadcast %40 : vector<1x8x1xf32> to vector<1x8x8xf32>
    %42 = arith.mulf %39, %41 : vector<1x8x8xf32>
    %43 = vector.shape_cast %42 : vector<1x8x8xf32> to vector<8x8xf32>
    %44 = arith.truncf %43 : vector<8x8xf32> to vector<8x8xbf16>
    %c0_26 = arith.constant 0 : index
    %c0_27 = arith.constant 0 : index
    %45 = vector.load %arg10[%c0_26, %c0_27] : memref<8x32xbf16, #tpu.memory_space<vmem>>, vector<8x32xbf16>
    %cst_28 = arith.constant dense<0.000000e+00> : vector<8x32xf32>
    %46 = tpu.matmul %44, %45, %cst_28 {dimension_numbers = #tpu.dot_dimension_numbers<[1], [0], [0], [1], [0, 0, 1, 1], [], []>} : vector<8x8xbf16>, vector<8x32xbf16>, vector<8x32xf32> -> vector<8x32xf32>
    %c0_29 = arith.constant 0 : index
    %c0_30 = arith.constant 0 : index
    %47 = vector.load %arg11[%c0_29, %c0_30] : memref<1x32xf32, #tpu.memory_space<vmem>>, vector<1x32xf32>
    %48 = vector.broadcast %47 : vector<1x32xf32> to vector<8x32xf32>
    %49 = arith.addf %46, %48 : vector<8x32xf32>
    %c0_31 = arith.constant 0 : index
    %c0_32 = arith.constant 0 : index
    %50 = vector.load %arg12[%c0_31, %c0_32] : memref<8x32xf32, #tpu.memory_space<vmem>>, vector<8x32xf32>
    tpu.vector_store %arg12[%c0_31, %c0_32], %49 {strides = array<i32>} : memref<8x32xf32, #tpu.memory_space<vmem>>, vector<8x32xf32>,
    return
  }
  func.func @transform_0(%arg0: i32) -> (i32, i32, i32) {
    %c0_i32 = arith.constant 0 : i32
    %c0_i32_0 = arith.constant 0 : i32
    %c0_i32_1 = arith.constant 0 : i32
    return %arg0, %c0_i32, %c0_i32_0 : i32, i32, i32
  }
  func.func @transform_1(%arg0: i32) -> (i32, i32, i32) {
    %c0_i32 = arith.constant 0 : i32
    %c0_i32_0 = arith.constant 0 : i32
    %c0_i32_1 = arith.constant 0 : i32
    return %arg0, %c0_i32, %c0_i32_0 : i32, i32, i32
  }
  func.func @transform_2(%arg0: i32) -> (i32, i32, i32) {
    %c0_i32 = arith.constant 0 : i32
    %c0_i32_0 = arith.constant 0 : i32
    %c0_i32_1 = arith.constant 0 : i32
    return %arg0, %c0_i32, %c0_i32_0 : i32, i32, i32
  }
  func.func @transform_3(%arg0: i32) -> (i32, i32) {
    %c0_i32 = arith.constant 0 : i32
    %c0_i32_0 = arith.constant 0 : i32
    %c0_i32_1 = arith.constant 0 : i32
    return %c0_i32, %c0_i32_0 : i32, i32
  }
  func.func @transform_4(%arg0: i32) -> (i32, i32) {
    %c0_i32 = arith.constant 0 : i32
    %c0_i32_0 = arith.constant 0 : i32
    %c0_i32_1 = arith.constant 0 : i32
    return %c0_i32, %c0_i32_0 : i32, i32
  }
  func.func @transform_5(%arg0: i32) -> (i32, i32) {
    %c0_i32 = arith.constant 0 : i32
    %c0_i32_0 = arith.constant 0 : i32
    %c0_i32_1 = arith.constant 0 : i32
    return %c0_i32, %c0_i32_0 : i32, i32
  }
  func.func @transform_6(%arg0: i32) -> (i32, i32) {
    %c0_i32 = arith.constant 0 : i32
    %c0_i32_0 = arith.constant 0 : i32
    %c0_i32_1 = arith.constant 0 : i32
    return %c0_i32, %c0_i32_0 : i32, i32
  }
  func.func @transform_7(%arg0: i32) -> (i32, i32) {
    %c0_i32 = arith.constant 0 : i32
    %c0_i32_0 = arith.constant 0 : i32
    %c0_i32_1 = arith.constant 0 : i32
    return %c0_i32, %c0_i32_0 : i32, i32
  }
  func.func @transform_8(%arg0: i32) -> (i32, i32) {
    %c0_i32 = arith.constant 0 : i32
    %c0_i32_0 = arith.constant 0 : i32
    %c0_i32_1 = arith.constant 0 : i32
    return %c0_i32, %c0_i32_0 : i32, i32
  }
  func.func @transform_9(%arg0: i32) -> (i32, i32) {
    %c0_i32 = arith.constant 0 : i32
    %c0_i32_0 = arith.constant 0 : i32
    %c0_i32_1 = arith.constant 0 : i32
    return %c0_i32, %c0_i32_0 : i32, i32
  }
  func.func @transform_10(%arg0: i32) -> (i32, i32) {
    %c0_i32 = arith.constant 0 : i32
    %c0_i32_0 = arith.constant 0 : i32
    %c0_i32_1 = arith.constant 0 : i32
    return %c0_i32, %c0_i32_0 : i32, i32
  }
  func.func @transform_11(%arg0: i32) -> (i32, i32) {
    %c0_i32 = arith.constant 0 : i32
    %c0_i32_0 = arith.constant 0 : i32
    return %arg0, %c0_i32 : i32, i32
  }
}

</mosaic_0001>

<bundles_post_ra>
// kernel: tpu_custom_call.1
= control target key start
LH: loop header
LB: loop body
LE: loop exit
PB: predicated region body
PF: predicated region fallthrough
CT: control target
= control target key end

     0   :  { %16 = vsyncpa [#allocation3], 0  ;;  %s1304_s0 = inlined_call_operand.vmem [shape: f32[2,8,32], index: 0, kind: input, shape index: {}]   ;;  %s1305_s1 = inlined_call_operand.vmem [shape: f32[2,8,32], index: 1, kind: input, shape index: {}]   ;;  %s1306_s2 = inlined_call_operand.vmem [shape: f32[2,8,32], index: 2, kind: input, shape index: {}]   ;;  %s1307_s3 = inlined_call_operand.vmem [shape: bf16[32,8], index: 3, kind: input, shape index: {}]   ;;  %s1308_s4 = inlined_call_operand.vmem [shape: bf16[32,8], index: 4, kind: input, shape index: {}]   ;;  %s1309_s5 = inlined_call_operand.vmem [shape: bf16[32,8], index: 5, kind: input, shape index: {}]   ;;  %s1310_s6 = inlined_call_operand.vmem [shape: f32[1,8], index: 6, kind: input, shape index: {}]   ;;  %s1311_s7 = inlined_call_operand.vmem [shape: f32[1,8], index: 7, kind: input, shape index: {}]   ;;  %s1312_s8 = inlined_call_operand.vmem [shape: f32[1,8], index: 8, kind: input, shape index: {}]   ;;  %s1313_s9 = inlined_call_operand.vmem [shape: bf16[8,32], index: 9, kind: input, shape index: {}]   ;;  %s1314_s10 = inlined_call_operand.vmem [shape: f32[1,32], index: 10, kind: input, shape index: {}]   ;;  %s1315_s11 = inlined_call_operand.hbm [shape: f32[16,32], index: 11, kind: output, shape index: {}]  }
   0x1   :  { %18 = vsyncpa [#allocation3 + $0x1], 0  ;;  %s1147_s17 = smov 0   ;;  %s1149_s18 = smov 0  }
   0x2   :  { %s1151_s19 = smov 0   ;;  %s1153_s20 = smov 0  }
   0x3 LB: > { %s1168_s21 = sadd.s32 4294967295, %s1082_s20   ;;  %s884_s22 = sadd.s32 4294967294, %s1082_s20   ;;  %s1082_s20 = sphi %s1153_s20, %s1321_s20   ;;  %s1078_s19 = sphi %s1151_s19, %s1320_s19   ;;  %s1074_s18 = sphi %s1149_s18, %s1319_s18   ;;  %s1070_s17 = sphi %s1147_s17, %s1318_s17  }
   0x4   : > { %s1172_s23 = sadd.s32 1, %s1082_s20   ;;  %s277_s24 = sadd.s32 1, %s1078_s19 }
   0x5   : > { %s274_s25 = ssub.s32 %s1082_s20, %s1172_s23  ;;  %p287_p0 = scmp.ne.s32.totalorder %s1078_s19, %s1074_s18 }
   0x6   : > { %p275_p1 = scmp.eq.s32.totalorder %s274_s25, 0  ;;  %p288_p2 = scmp.eq.s32.totalorder %s1168_s21, 1 }
   0x7   : > { %p293_p3 = scmp.ne.s32.totalorder %s1074_s18, %s1070_s17  ;;  %p294_p4 = scmp.eq.s32.totalorder %s884_s22, 1 }
   0x8   : > { %s1183_s26 = scalar_select %p275_p1, %s1078_s19, %s277_s24  }
   0x9   : > { %p1185_p5 = por %p288_p2, %p287_p0  ;;  %p1189_p6 = por %p294_p4, %p293_p3 }
   0xa   : > { %p887_p7 = scmp.ge.s32.totalorder %s1082_s20, 1  ;;  %p357_p8 = scmp.lt.s32.totalorder %s1082_s20, 3 }
   0xc   : > { %p358_p9 = pnand %p887_p7, %p357_p8 }
   0xd   : > { %v1010_v0 = vld [vmem:[%s1308_s4] sm:$0xff] (!%p358_p9)   ;;  %v1084_v1 = vmov (!%p358_p9), 0.0   ;;  %v1011_v2 = vld [vmem:[%s1308_s4 + $0x8] sm:$0xff] (!%p358_p9)   ;;  %vm1085_vm0 = vmmov (!%p358_p9), 0   ;;  %p404_p10 = scmp.lt.s32.totalorder (!%p358_p9), %s1168_s21, 1  ;;  %vm446_vm1 = vcmask (!%p358_p9), 261120  }
   0xe   : > { %361 = sbr.rel (%p358_p9) target bundleno = 1068 (0x42c), region = 64  ;;  %935 = vmatprep.subr.bf16.mxu1 (!%p358_p9), %v1084_v1  ;;  %927 = vmatprep.subr.bf16.mxu0 (!%p358_p9), %v1084_v1  ;;  %v1012_v3 = vld [vmem:[%s1307_s3] sm:$0xff] (!%p358_p9)   ;;  %v1013_v4 = vld [vmem:[%s1307_s3 + $0x8] sm:$0xff] (!%p358_p9)   ;;  %vm624_vm2 = vcmask (!%p358_p9), 64512   ;;  %vm685_vm3 = vcmask (!%p358_p9), 1043456   ;;  %s1086_s14 = smov (!%p358_p9), [#allocation2]  }
   0xf   : > { %936 = vmatpush3.bf16.msra.mxu1 (!%p358_p9), %v1010_v0  ;;  %939 = vmatprep.mubr.msk.bf16.mxu1 (!%p358_p9), %vm1085_vm0, %v1084_v1  ;;  %v1014_v9 = vld [vmem:[%s1309_s5] sm:$0xff] (!%p358_p9)   ;;  %v1015_v10 = vld [vmem:[%s1309_s5 + $0x8] sm:$0xff] (!%p358_p9)  }
  0x10   : > { %937 = vmatprep.subr.bf16.mxu1 (!%p358_p9), %v1084_v1  ;;  %931 = vmatprep.mubr.msk.bf16.mxu0 (!%p358_p9), %vm1085_vm0, %v1084_v1  ;;  %v896_v13 = vld [vmem:[%s1311_s7] ss:$0 sm:$0xff] (!%p358_p9) }
  0x11   : > { %928 = vmatpush3.bf16.msra.mxu0 (!%p358_p9), %v1012_v3  ;;  %v892_v20 = vld [vmem:[%s1310_s6] ss:$0 sm:$0xff] (!%p358_p9) }
  0x12   : > { %929 = vmatprep.subr.bf16.mxu0 (!%p358_p9), %v1084_v1  ;;  %v900_v33 = vld [vmem:[%s1312_s8] ss:$0 sm:$0xff] (!%p358_p9) }
  0x13   : > { %938 = vmatpush3.bf16.msra.mxu1 (!%p358_p9), %v1011_v2  ;;  %v732_v47 = vld [vmem:[%s1313_s9] sm:$0xf] (!%p358_p9) }
  0x14   : > { %951 = vmatprep.subr.bf16.mxu1 (!%p358_p9), %v1084_v1  ;;  %v744_v48 = vsel (!%p358_p9), %vm685_vm3, %v732_v47, 0  ;;  %v906_v57 = vld [vmem:[%s1314_s10] ss:$0 sm:$0xff] (!%p358_p9) }
  0x15   : > { %s405_s16 = scalar_select %p404_p10, %s1168_s21, 1  ;;  %930 = vmatpush3.bf16.msra.mxu0 %v1013_v4 }
  0x16   : > { %943 = vmatprep.subr.bf16.mxu0 %v1084_v1 }
  0x17   : > { %s889_s25 = sshll.u32 %s405_s16, 3 }
  0x18   : > { %s411_s12 = scalar_lea.vmem %s1305_s1, %s889_s25  ;;  %s407_s15 = scalar_lea.vmem %s1304_s0, %s889_s25 }
  0x19   : > { %v419_v5 = vld [vmem:[%s411_s12] sm:$0xff]  ;;  %s415_s30 = scalar_lea.vmem %s1306_s2, %s889_s25  ;;  %s401_s12 = sand.u32 1, %s1074_s18  }
  0x1a   : > { %v417_v6 = vld [vmem:[%s407_s15] sm:$0xff]  ;;  %v420_v7 = vpack.c.bf16 %v419_v5, %v419_v5  ;;  %s888_s13 = sshll.u32 %s401_s12, 3  ;;  %s909_s25 = sshll.u32 %s1168_s21, 7 }
  0x1b   : > { %v418_v8 = vpack.c.bf16 %v417_v6, %v417_v6  ;;  %v421_v11 = vld [vmem:[%s415_s30] sm:$0xff]  ;;  %s403_s16 = scalar_lea.vmem [#allocation2], %s888_s13  ;;  %s1261_s30 = scalar_lea.hbm %s1315_s11, %s909_s25 }
  0x1c   : > { %940 = vmatmul.mubr.msk.bf16.vlgmr.msra.gmra.mrb[0].mxu1 %vm446_vm1, %v420_v7  ;;  %v422_v12 = vpack.c.bf16 %v421_v11, %v421_v11  ;;  %s801_s22 = sshll.u32 %s403_s16, 4  ;;  %s788_s21 = scalar_lea.sflag [#allocation3], %s401_s12  ;;  %s1263_s22 = int_to_ptr.vmem [resolvable:$true] %s801_s22 }
  0x1d   : > { %932 = vmatmul.mubr.msk.bf16.vlgmr.msra.gmra.mrb[0].mxu0 %vm446_vm1, %v418_v8  ;;  %953 = vmatprep.mubr.msk.bf16.mxu1 %vm1085_vm0, %v1084_v1  ;;  %s1020_s13 = scalar_lea.vmem %s1263_s22, 128  ;;  %s1024_s15 = sshll.u32 %s1086_s14, 4  ;;  %s1025_s15 = int_to_ptr.vmem [resolvable:$false] %s1024_s15 }
  0x1e   : > { %947 = vmatprep.mubr.msk.bf16.mxu0 %vm1085_vm0, %v1084_v1  ;;  %944 = vmatpush3.bf16.msra.mxu0 %v1014_v9  ;;  %p1021_p11 = scmp.ne.s32.totalorder %s1263_s22, %s1020_s13  ;;  %s1026_s25 = scalar_lea.vmem %s1025_s15, 256 }
  0x1f   : > { %945 = vmatprep.subr.bf16.mxu0 %v1084_v1  ;;  %p1027_p0 = scmp.lt.s32.totalorder %s1263_s22, %s1025_s15  ;;  %p1028_p1 = scmp.lt.s32.totalorder %s1026_s25, %s1020_s13 }
  0x20   : > { %p1022_p12 = pnand %p1021_p11, %p1185_p5 }
  0x21   : > { %p1029_p2 = por %p1028_p1, %p1027_p0 }
  0x22   : > { %946 = vmatpush3.bf16.msra.mxu0 %v1015_v10  ;;  %p1023_p13 = pneg %p1022_p12 }
  0x23   : > { %957 = vmatprep.subr.bf16.mxu0 %v1084_v1 }
  0x24   : > { %p1030_p3 = pnand %p1029_p2, %p1023_p13 }
  0x25   : > { %948 = vmatmul.mubr.msk.bf16.vlgmr.msra.gmra.mrb[4].mxu0 %vm446_vm1, %v422_v12 }
  0x26   : > { %959 = vmatprep.mubr.msk.bf16.mxu0 %vm1085_vm0, %v1084_v1 }
  0xef   : > { %v550_v14 = vpop.f32.mrb[0].mxu1 }
  0xf0   : > { %v484_v15 = vpop.f32.mrb[0].mxu0  ;;  %v551_v16 = vadd.f32 %v896_v13, %v550_v14  ;;  %v941_v17 = vpop.f32.mrb[1].mxu1 }
  0xf1   : > { %v933_v18 = vpop.f32.mrb[1].mxu0  ;;  %v553_v19 = vpop.f32.mrb[2].mxu1  ;;  %v485_v26 = vadd.f32 %v892_v20, %v484_v15 }
  0xf2   : > { %v487_v21 = vpop.f32.mrb[2].mxu0  ;;  %v623_v22 = vpack.c.bf16 %v551_v16, %v551_v16  ;;  %v942_v23 = vpop.f32.mrb[3].mxu1 }
  0xf3   : > { %v934_v24 = vpop.f32.mrb[3].mxu0  ;;  %v622_v27 = vpack.c.bf16 %v485_v26, %v485_v26 }
  0xf4   : > { %v629_v25 = vsel %vm624_vm2, %v623_v22, 0 }
  0xf5   : > { %952 = vmatpush3.bf16.xpose.msra.mxu1 %v629_v25 }
  0xf6   : > { %963 = vmatprep.subr.bf16.mxu1 %v1084_v1 }
  0xf8   : > { %v616_v34 = vpop.f32.mrb[4].mxu0 }
  0xf9   : > { %v617_v35 = vadd.f32 %v900_v33, %v616_v34  ;;  %v949_v36 = vpop.f32.mrb[5].mxu0 }
  0xfa   : > { %v619_v37 = vpop.f32.mrb[6].mxu0 }
  0xfb   : > { %v681_v38 = vpack.c.bf16 %v617_v35, %v617_v35  ;;  %v950_v39 = vpop.f32.mrb[7].mxu0 }
  0xfc   : > { %954 = vmatmul.mubr.msk.bf16.vlgmr.msra.gmra.mrb[4].mxu1 %vm624_vm2, %v622_v27 }
  0xfd   : > { %965 = vmatprep.mubr.msk.bf16.mxu1 %vm1085_vm0, %v1084_v1  ;;  %v687_v40 = vsel %vm685_vm3, %v681_v38, 0  ;;  %964 = vmatpush3.bf16.msra.mxu1 %v744_v48 }
  0xfe   : > { %958 = vmatpush3.bf16.msra.mxu0 %v687_v40 }
 0x1cf   : > { %v665_v28 = vpop.f32.mrb[4].mxu1 }
 0x1d0   : > { %v955_v29 = vpop.f32.mrb[5].mxu1  ;;  %v671_v30 = vsel %vm624_vm2, %v665_v28, -inf }
 0x1d1   : > { %672 = vmax.xlane.f32.xlu0 %v671_v30  ;;  %v668_v31 = vpop.f32.mrb[6].mxu1 }
 0x1d2   : > { %v956_v32 = vpop.f32.mrb[7].mxu1 }
 0x25e   : > { %v673_v41 = vpop.xlane.xlu0 %672 }
 0x25f   : > { %v674_v42 = vsub.f32 %v665_v28, %v673_v41 }
 0x261   : > { %v675_v43 = vmul.f32 1.442695, %v674_v42 }
 0x263   : > { %1016 = vpow2.f32 %v675_v43 }
 0x26d   : > { %v1017_v44 = vpop.eup %1016 }
 0x26e   : > { %v677_v45 = vsel %vm624_vm2, %v1017_v44, 0.0  ;;  %v680_v46 = vpack.c.bf16 %v1017_v44, %v1017_v44 }
 0x26f   : > { %678 = vadd.xlane.f32.xlu0 %v677_v45 }
 0x270   : > { %960 = vmatmul.mubr.msk.bf16.vlgmr.msra.gmra.mrb[8].mxu0 %vm624_vm2, %v680_v46 }
 0x2fc   : > { %v679_v49 = vpop.xlane.xlu0 %678 }
 0x2fd   : > { %1018 = vrcp.f32 %v679_v49 }
 0x307   : > { %v1019_v50 = vpop.eup %1018 }
 0x343   : > { %v723_v51 = vpop.f32.mrb[8].mxu0 }
 0x344   : > { %v730_v52 = vmul.f32 %v1019_v50, %v723_v51  ;;  %v961_v53 = vpop.f32.mrb[9].mxu0 }
 0x345   : > { %v726_v54 = vpop.f32.mrb[10].mxu0 }
 0x346   : > { %v731_v55 = vpack.c.bf16 %v730_v52, %v730_v52  ;;  %v962_v56 = vpop.f32.mrb[11].mxu0 }
 0x348   : > { %966 = vmatmul.mubr.msk.bf16.vlgmr.msra.gmra.mrb[8].mxu1 %vm624_vm2, %v731_v55 }
 0x41b   : > { %v780_v58 = vpop.f32.mrb[8].mxu1 }
 0x41c   : > { %v781_v59 = vadd.f32 %v906_v57, %v780_v58  ;;  %v967_v60 = vpop.f32.mrb[9].mxu1 }
 0x41d   : > { %v783_v61 = vpop.f32.mrb[10].mxu1 }
 0x41e   : > { %v968_v62 = vpop.f32.mrb[11].mxu1  ;;  %786 = vst.msk [vmem:[%s403_s16] sm:$0xff] %vm446_vm1, %v781_v59 }
 0x41f   : > { %1033 = shalt.err (!%p1030_p3)
}
 0x420   : > { %s1034_s12 = scalar_lea.hbm %s1261_s30, 128  ;;  %s1038_s29 = scalar_lea.hbm %s1315_s11, 256 }
 0x421   : > { %p1035_p4 = scmp.ne.s32.totalorder %s1261_s30, %s1034_s12  ;;  %p1039_p9 = scmp.lt.u32.totalorder %s1261_s30, %s1315_s11 }
 0x422   : > { %p1040_p10 = scmp.lt.u32.totalorder %s1038_s29, %s1034_s12  ;;  %p1042_p12 = scmp.lt.u32.totalorder %s1034_s12, %s1261_s30 }
 0x423   : > { %p1036_p7 = pnand %p1035_p4, %p1185_p5 }
 0x424   : > { %p1041_p11 = por %p1040_p10, %p1039_p9 }
 0x425   : > { %p1037_p8 = pneg %p1036_p7 }
 0x426   : > { %p1043_p13 = por %p1042_p12, %p1041_p11 }
 0x428   : > { %p1044_p0 = pnand %p1043_p13, %p1037_p8 }
 0x42a   : > { %1047 = shalt.err (!%p1044_p0)
}
 0x42b   : > { %969 = dma.vmem_to_hbm [thread:$0]  (%p1185_p5), %s1263_s22, 128, %s1261_s30, %s788_s21  }
 0x42c PF: > { %p975_p1 = scmp.ge.s32.totalorder %s1082_s20, 2  ;;  %s813_s13 = sand.u32 1, %s1070_s17  }
 0x42d   : > { %s814_s25 = scalar_lea.sflag [#allocation3], %s813_s13 }
 0x42e   : > { %p972_p2 = pnand %p975_p1, %p1189_p6 }
 0x430   : > { %1065 = dma.done.wait (!%p972_p2), %s814_s25, 128  }
 0x431   : > { %1067 = vsyncadd (!%p972_p2), %s814_s25, 4294967168  ;;  %p21_p3 = scmp.ge.s32.totalorder %s1172_s23, 4   ;;  %s1318_s17 = smov %s1074_s18 }
 0x432   : > { %s1319_s18 = smov %s1078_s19  ;;  %s1320_s19 = smov %s1183_s26 }
 0x433   : > { %s1321_s20 = smov %s1172_s23  ;;  %23 = sbr.rel (!%p21_p3) target bundleno = 3 (0x3), region = 105 }
 0x43a   :  { %819 = vsyncpa [#allocation3], 1 }
 0x43b   :  { %821 = vsyncpa [#allocation3 + $0x1], 1 }

</bundles_post_ra>
